<compile_context>
chip_gen: v7x
topology: tpu7x:2x2x1
jax: 0.10.0
libtpu: 0.0.40
codegen_flags: <defaults>
</compile_context>

<pallas_src>
import jax
import jax.numpy as jnp
from jax.experimental import pallas as pl
from jax.experimental.pallas import tpu as pltpu


def _entity_head_kernel(x_ref, offT_ref, w1_ref, b1_ref, w2_ref, b2_ref, o_ref):
    # x_ref:    (TB, S, D)   bf16 bert hidden states for TB batch elements
    # offT_ref: (TB, W, S)   bf16 subword_offset_matrix, pre-transposed (0/1)
    # w1_ref:   (D, H) bf16, b1_ref: (1, H) f32
    # w2_ref:   (H, Ep) bf16 (entity dim zero-padded to Ep), b2_ref: (1, Ep) f32
    # o_ref:    (TB, W, Ep)  bf16
    TB, S, D = x_ref.shape
    W = offT_ref.shape[1]
    H = w1_ref.shape[1]
    Ep = w2_ref.shape[1]

    # fc1 + tanh over all TB*S subword positions at once (tall MXU M dim).
    # Fused bf16 cast: no [TB*S, H] f32 intermediate slab persists.
    x = x_ref[...].reshape(TB * S, D)                              # [TB*S, D] bf16
    h = jnp.tanh(
        jnp.dot(x, w1_ref[...], preferred_element_type=jnp.float32)
        + b1_ref[...]                                              # [1,H] broadcast
    ).astype(jnp.bfloat16)                                         # [TB*S, H] bf16
    h = h.reshape(TB, S, H)

    # Aggregate subwords -> words before the (lane-sparse) entity projection:
    #   agg[b, w, :] = sum_s off[b, s, w] * h[b, s, :]
    offT = offT_ref[...]                                           # [TB, W, S] bf16
    agg = jnp.einsum(
        "bws,bsh->bwh", offT, h, preferred_element_type=jnp.float32
    )                                                              # [TB, W, H] f32

    # Bias term: out += (sum_s off[b,s,w]) * b2.  f32 accumulation guards
    # against rounding for words with many subwords.
    off_rowsum = jnp.sum(offT.astype(jnp.float32), axis=2, keepdims=True)  # [TB,W,1]

    # Single tall matmul for the entity projection: [TB*W, H] @ [H, Ep].
    out2d = (
        jnp.dot(
            agg.reshape(TB * W, H).astype(jnp.bfloat16),
            w2_ref[...],
            preferred_element_type=jnp.float32,
        )
        + off_rowsum.reshape(TB * W, 1) * b2_ref[...]              # [1,Ep] broadcast
    )                                                              # [TB*W, Ep] f32
    o_ref[...] = out2d.reshape(TB, W, Ep).astype(o_ref.dtype)


def _default_max_batch_block():
    """64 MiB VMEM parts (v7x) -> small batch block; 128 MiB (v5e/v6e) -> larger."""
    try:
        vmem = pltpu.get_tpu_info().vmem_capacity_bytes
    except Exception:
        vmem = 128 << 20
    return 4 if vmem <= (64 << 20) else 8


def _pick_batch_block(batch, max_tb):
    """Largest batch block <= max_tb dividing B while keeping >= 2 grid steps
    (so both TensorCores on multi-TC parts get work)."""
    for tb in range(min(max_tb, batch), 0, -1):
        if batch % tb == 0 and batch // tb >= 2:
            return tb
    return 1


def _vmem_limit_bytes(TB, S, D, W, H, Ep):
    """Explicit scoped-VMEM budget: double-buffered I/O blocks + weights
    + in-kernel intermediates, with generous headroom."""
    io = 2 * (TB * S * D * 2 + TB * W * S * 2 + TB * W * Ep * 2)   # bf16 blocks, x2 buf
    wts = 2 * (D * H * 2 + H * 4 + H * Ep * 2 + Ep * 4)
    tmp = TB * S * H * 6 + TB * W * H * 6 + TB * W * Ep * 6        # f32+bf16 temporaries
    est = io + wts + tmp
    return int(min(2 * est + (16 << 20), 112 << 20))


def entity_head_forward(h_bert, offset, w1, b1, w2, b2, *, max_batch_block=None):
    """h_bert: [B,S,D] (f32 or bf16), offset: [B,S,W] -> logits [B,W,E] f32."""
    B, S, D = h_bert.shape
    W = offset.shape[2]
    H = w1.shape[1]
    E = w2.shape[1]

    # Lane-dense epilogue: pad the entity dim up to a multiple of 128 lanes.
    E_pad = max(128, ((E + 127) // 128) * 128)
    w2p = jnp.pad(w2, ((0, 0), (0, E_pad - E))).astype(jnp.bfloat16)
    b2p = jnp.pad(b2.astype(jnp.float32), ((0, 0), (0, E_pad - E)))

    # Pre-transpose AND narrow the offsets in one fused wrapper op so the
    # kernel's biggest DMA stream is bf16 and contracts over its last axis.
    offT = jnp.swapaxes(offset, 1, 2).astype(jnp.bfloat16)         # [B, W, S] bf16

    # bf16 activations / weights for the MXU (f32 accumulation in-kernel).
    # If the upstream producer already emits bf16 there is no extra HBM pass.
    x_bf16 = h_bert if h_bert.dtype == jnp.bfloat16 else h_bert.astype(jnp.bfloat16)
    w1_bf16 = w1.astype(jnp.bfloat16)
    b1f = b1.astype(jnp.float32)

    if max_batch_block is None:
        max_batch_block = _default_max_batch_block()
    TB = _pick_batch_block(B, max_batch_block)
    grid = (B // TB,)

    out = pl.pallas_call(
        _entity_head_kernel,
        out_shape=jax.ShapeDtypeStruct((B, W, E_pad), jnp.bfloat16),
        grid_spec=pltpu.PrefetchScalarGridSpec(
            num_scalar_prefetch=0,
            grid=grid,
            in_specs=[
                pl.BlockSpec((TB, S, D), lambda b: (b, 0, 0)),
                pl.BlockSpec((TB, W, S), lambda b: (b, 0, 0)),
                pl.BlockSpec((D, H), lambda b: (0, 0)),
                pl.BlockSpec((1, H), lambda b: (0, 0)),
                pl.BlockSpec((H, E_pad), lambda b: (0, 0)),
                pl.BlockSpec((1, E_pad), lambda b: (0, 0)),
            ],
            out_specs=pl.BlockSpec((TB, W, E_pad), lambda b: (b, 0, 0)),
        ),
        compiler_params=pltpu.CompilerParams(
            dimension_semantics=("parallel",),
            vmem_limit_bytes=_vmem_limit_bytes(TB, S, D, W, H, E_pad),
        ),
    )(x_bf16, offT, w1_bf16, b1f, w2p, b2p)

    # Slice away the lane padding; return f32 logits like the PyTorch module.
    return out[:, :, :E].astype(jnp.float32)


def reference_forward(h_bert, offset, w1, b1, w2, b2):
    h = jnp.tanh(jnp.einsum("bsd,dh->bsh", h_bert, w1) + b1[0])
    logits = jnp.einsum("bsh,he->bse", h, w2) + b2[0]
    return jnp.einsum("bse,bsw->bwe", logits, offset)


if __name__ == "__main__":
    # Small, forward-consistent shapes.
    B = 2          # batch
    S = 8          # subword sequence length
    W = 8          # number of words (subword_offset_matrix word axis)
    VOCAB = 64     # toy vocab for the synthetic embedding
    D_BERT = 32    # stand-in for BERT output dim (768 in real model)
    HIDDEN = 32    # args.hidden_dim (256 in real model)
    N_ENT = 8      # len(ent_dic)

    key = jax.random.PRNGKey(0)
    k_ids, k_emb, k_w1, k_b1, k_w2, k_b2, k_off = jax.random.split(key, 7)

    # Synthetic inputs (stand-ins for the tokenized batch dict).
    input_ids = jax.random.randint(k_ids, (B, S), 0, VOCAB)
    input_ids_mask = jnp.ones((B, S), dtype=jnp.float32)
    # subword -> word aggregation matrix [B, S, W] (0/1 entries here).
    subword_offset_matrix = (
        jax.random.uniform(k_off, (B, S, W)) > 0.5
    ).astype(jnp.float32)

    # Deterministic parameters.
    embed = jax.random.normal(k_emb, (VOCAB, D_BERT), dtype=jnp.float32) * 0.1
    w1 = jax.random.normal(k_w1, (D_BERT, HIDDEN), dtype=jnp.float32) * 0.1
    b1 = jax.random.normal(k_b1, (1, HIDDEN), dtype=jnp.float32) * 0.1
    w2 = jax.random.normal(k_w2, (HIDDEN, N_ENT), dtype=jnp.float32) * 0.1
    b2 = jax.random.normal(k_b2, (1, N_ENT), dtype=jnp.float32) * 0.1

    # Glue (plain JAX): synthetic BERT hidden states.  The "encoder" emits
    # bf16 directly so the kernel wrapper does not add a cast HBM pass.
    h_bert = embed[input_ids] * input_ids_mask[..., None]          # [B, S, D] f32
    h_bert_bf16 = h_bert.astype(jnp.bfloat16)

    out = entity_head_forward(h_bert_bf16, subword_offset_matrix, w1, b1, w2, b2)
    out = jax.block_until_ready(out)

    ref = reference_forward(h_bert, subword_offset_matrix, w1, b1, w2, b2)
    assert out.shape == (B, W, N_ENT)
    # bf16 MXU inputs / bf16 output -> slightly looser tolerance vs f32 ref.
    assert jnp.allclose(out, ref, atol=2e-2, rtol=2e-2), (
        float(jnp.max(jnp.abs(out - ref)))
    )

    print("KERNEL_OK")
</pallas_src>

<mosaic_0001>
module attributes {stable_mosaic.version = 11 : i64} {
  func.func @_entity_head_kernel(%arg0: i32, %arg1: memref<1x8x32xbf16, #tpu.memory_space<vmem>>, %arg2: memref<1x8x8xbf16, #tpu.memory_space<vmem>>, %arg3: memref<32x32xbf16, #tpu.memory_space<vmem>>, %arg4: memref<1x32xf32, #tpu.memory_space<vmem>>, %arg5: memref<32x128xbf16, #tpu.memory_space<vmem>>, %arg6: memref<1x128xf32, #tpu.memory_space<vmem>>, %arg7: memref<1x8x128xbf16, #tpu.memory_space<vmem>>) attributes {dimension_semantics = [#tpu.dimension_semantics<parallel>], iteration_bounds = array<i64: 2>, scalar_prefetch = 0 : i64, scratch_operands = 0 : i64, tpu.core_type = #tpu.core_type<tc>, window_params = [{transform_indices = @transform_0, window_bounds = array<i64: 1, 8, 32>}, {transform_indices = @transform_1, window_bounds = array<i64: 1, 8, 8>}, {pipeline_mode = #tpu.pipeline_mode<synchronous>, transform_indices = @transform_2, window_bounds = array<i64: 32, 32>}, {pipeline_mode = #tpu.pipeline_mode<synchronous>, transform_indices = @transform_3, window_bounds = array<i64: 1, 32>}, {pipeline_mode = #tpu.pipeline_mode<synchronous>, transform_indices = @transform_4, window_bounds = array<i64: 32, 128>}, {pipeline_mode = #tpu.pipeline_mode<synchronous>, transform_indices = @transform_5, window_bounds = array<i64: 1, 128>}, {transform_indices = @transform_6, window_bounds = array<i64: 1, 8, 128>}]} {
    %c0 = arith.constant 0 : index
    %c0_0 = arith.constant 0 : index
    %c0_1 = arith.constant 0 : index
    %0 = vector.load %arg1[%c0, %c0_0, %c0_1] : memref<1x8x32xbf16, #tpu.memory_space<vmem>>, vector<1x8x32xbf16>
    %1 = vector.shape_cast %0 : vector<1x8x32xbf16> to vector<8x32xbf16>
    %c0_2 = arith.constant 0 : index
    %c0_3 = arith.constant 0 : index
    %2 = vector.load %arg3[%c0_2, %c0_3] : memref<32x32xbf16, #tpu.memory_space<vmem>>, vector<32x32xbf16>
    %cst = arith.constant dense<0.000000e+00> : vector<8x32xf32>
    %3 = tpu.matmul %1, %2, %cst {dimension_numbers = #tpu.dot_dimension_numbers<[1], [0], [0], [1], [0, 0, 1, 1], [], []>} : vector<8x32xbf16>, vector<32x32xbf16>, vector<8x32xf32> -> vector<8x32xf32>
    %c0_4 = arith.constant 0 : index
    %c0_5 = arith.constant 0 : index
    %4 = vector.load %arg4[%c0_4, %c0_5] : memref<1x32xf32, #tpu.memory_space<vmem>>, vector<1x32xf32>
    %5 = vector.broadcast %4 : vector<1x32xf32> to vector<8x32xf32>
    %6 = arith.addf %3, %5 : vector<8x32xf32>
    %7 = math.tanh %6 : vector<8x32xf32>
    %8 = arith.truncf %7 : vector<8x32xf32> to vector<8x32xbf16>
    %9 = vector.shape_cast %8 : vector<8x32xbf16> to vector<1x8x32xbf16>
    %c0_6 = arith.constant 0 : index
    %c0_7 = arith.constant 0 : index
    %c0_8 = arith.constant 0 : index
    %10 = vector.load %arg2[%c0_6, %c0_7, %c0_8] : memref<1x8x8xbf16, #tpu.memory_space<vmem>>, vector<1x8x8xbf16>
    "tpu.trace_start"() <{level = 10 : i32, message = "bws,bsh->bwh"}> : () -> ()
    %cst_9 = arith.constant dense<0.000000e+00> : vector<1x8x32xf32>
    %11 = tpu.matmul %10, %9, %cst_9 {dimension_numbers = #tpu.dot_dimension_numbers<[2], [1], [1], [2], [0, 0, 0, 1, 1, 2], [0], [0]>} : vector<1x8x8xbf16>, vector<1x8x32xbf16>, vector<1x8x32xf32> -> vector<1x8x32xf32>
    "tpu.trace_stop"() : () -> ()
    %12 = arith.extf %10 : vector<1x8x8xbf16> to vector<1x8x8xf32>
    %cst_10 = arith.constant dense<0.000000e+00> : vector<1x8xf32>
    %13 = vector.multi_reduction <add>, %12, %cst_10 [2] : vector<1x8x8xf32> to vector<1x8xf32>
    %14 = vector.shape_cast %13 : vector<1x8xf32> to vector<1x8x1xf32>
    %15 = vector.shape_cast %11 : vector<1x8x32xf32> to vector<8x32xf32>
    %16 = arith.truncf %15 : vector<8x32xf32> to vector<8x32xbf16>
    %c0_11 = arith.constant 0 : index
    %c0_12 = arith.constant 0 : index
    %17 = vector.load %arg5[%c0_11, %c0_12] : memref<32x128xbf16, #tpu.memory_space<vmem>>, vector<32x128xbf16>
    %cst_13 = arith.constant dense<0.000000e+00> : vector<8x128xf32>
    %18 = tpu.matmul %16, %17, %cst_13 {dimension_numbers = #tpu.dot_dimension_numbers<[1], [0], [0], [1], [0, 0, 1, 1], [], []>} : vector<8x32xbf16>, vector<32x128xbf16>, vector<8x128xf32> -> vector<8x128xf32>
    %19 = vector.shape_cast %14 : vector<1x8x1xf32> to vector<8x1xf32>
    %c0_14 = arith.constant 0 : index
    %c0_15 = arith.constant 0 : index
    %20 = vector.load %arg6[%c0_14, %c0_15] : memref<1x128xf32, #tpu.memory_space<vmem>>, vector<1x128xf32>
    %21 = vector.broadcast %19 : vector<8x1xf32> to vector<8x128xf32>
    %22 = vector.broadcast %20 : vector<1x128xf32> to vector<8x128xf32>
    %23 = arith.mulf %21, %22 : vector<8x128xf32>
    %24 = arith.addf %18, %23 : vector<8x128xf32>
    %25 = vector.shape_cast %24 : vector<8x128xf32> to vector<1x8x128xf32>
    %26 = arith.truncf %25 : vector<1x8x128xf32> to vector<1x8x128xbf16>
    %c0_16 = arith.constant 0 : index
    %c0_17 = arith.constant 0 : index
    %c0_18 = arith.constant 0 : index
    %27 = vector.load %arg7[%c0_16, %c0_17, %c0_18] : memref<1x8x128xbf16, #tpu.memory_space<vmem>>, vector<1x8x128xbf16>
    tpu.vector_store %arg7[%c0_16, %c0_17, %c0_18], %26 {strides = array<i32>} : memref<1x8x128xbf16, #tpu.memory_space<vmem>>, vector<1x8x128xbf16>,
    return
  }
  func.func @transform_0(%arg0: i32) -> (i32, i32, i32) {
    %c0_i32 = arith.constant 0 : i32
    %c0_i32_0 = arith.constant 0 : i32
    %c0_i32_1 = arith.constant 0 : i32
    return %arg0, %c0_i32, %c0_i32_0 : i32, i32, i32
  }
  func.func @transform_1(%arg0: i32) -> (i32, i32, i32) {
    %c0_i32 = arith.constant 0 : i32
    %c0_i32_0 = arith.constant 0 : i32
    %c0_i32_1 = arith.constant 0 : i32
    return %arg0, %c0_i32, %c0_i32_0 : i32, i32, i32
  }
  func.func @transform_2(%arg0: i32) -> (i32, i32) {
    %c0_i32 = arith.constant 0 : i32
    %c0_i32_0 = arith.constant 0 : i32
    %c0_i32_1 = arith.constant 0 : i32
    return %c0_i32, %c0_i32_0 : i32, i32
  }
  func.func @transform_3(%arg0: i32) -> (i32, i32) {
    %c0_i32 = arith.constant 0 : i32
    %c0_i32_0 = arith.constant 0 : i32
    %c0_i32_1 = arith.constant 0 : i32
    return %c0_i32, %c0_i32_0 : i32, i32
  }
  func.func @transform_4(%arg0: i32) -> (i32, i32) {
    %c0_i32 = arith.constant 0 : i32
    %c0_i32_0 = arith.constant 0 : i32
    %c0_i32_1 = arith.constant 0 : i32
    return %c0_i32, %c0_i32_0 : i32, i32
  }
  func.func @transform_5(%arg0: i32) -> (i32, i32) {
    %c0_i32 = arith.constant 0 : i32
    %c0_i32_0 = arith.constant 0 : i32
    %c0_i32_1 = arith.constant 0 : i32
    return %c0_i32, %c0_i32_0 : i32, i32
  }
  func.func @transform_6(%arg0: i32) -> (i32, i32, i32) {
    %c0_i32 = arith.constant 0 : i32
    %c0_i32_0 = arith.constant 0 : i32
    %c0_i32_1 = arith.constant 0 : i32
    return %arg0, %c0_i32, %c0_i32_0 : i32, i32, i32
  }
}

</mosaic_0001>

<bundles_post_ra>
// kernel: tpu_custom_call.1
= control target key start
LH: loop header
LB: loop body
LE: loop exit
PB: predicated region body
PF: predicated region fallthrough
CT: control target
= control target key end

     0   :  { %s1320_s0 = inlined_call_operand.hbm [shape: bf16[2,8,32], index: 0, kind: input, shape index: {}]   ;;  %s1321_s1 = inlined_call_operand.hbm [shape: bf16[2,8,8], index: 1, kind: input, shape index: {}]   ;;  %s1322_s2 = inlined_call_operand.hbm [shape: bf16[32,32], index: 2, kind: input, shape index: {}]   ;;  %s1323_s3 = inlined_call_operand.vmem [shape: f32[1,32], index: 3, kind: input, shape index: {}]   ;;  %s1324_s4 = inlined_call_operand.hbm [shape: bf16[32,128], index: 4, kind: input, shape index: {}]   ;;  %s1325_s5 = inlined_call_operand.vmem [shape: f32[1,128], index: 5, kind: input, shape index: {}]   ;;  %s1326_s6 = inlined_call_operand.hbm [shape: bf16[2,8,128], index: 6, kind: output, shape index: {}]  }
   0x1   :  { %1331 = sst [smem:[#allocation17_spill]] %s1322_s2 }
   0x2   :  { %1332 = sst [smem:[#allocation18_spill]] %s1324_s4 }
   0x3   :  { %11 = vsyncpa [#allocation3], 0 }
   0x4   :  { %13 = vsyncpa [#allocation3 + $0x1], 0 }
   0x5   :  { %14 = vsyncpa [#allocation6], 0 }
   0x6   :  { %16 = vsyncpa [#allocation6 + $0x1], 0 }
   0x7   :  { %17 = vsyncpa [#allocation9], 0 }
   0x8   :  { %18 = vsyncpa [#allocation4], 0 }
   0x9   :  { %20 = vsyncpa [#allocation4 + $0x1], 0  ;;  %s1033_s21 = smov 0   ;;  %s1035_s22 = smov 0  }
   0xa   :  { %s1037_s23 = smov 0   ;;  %s1039_s24 = smov 0  }
   0xb LB: > { %s1054_s25 = sadd.s32 4294967295, %s987_s24   ;;  %s653_s26 = sadd.s32 4294967294, %s987_s24   ;;  %s987_s24 = sphi %s1039_s24, %s1356_s24   ;;  %s983_s23 = sphi %s1037_s23, %s1355_s23   ;;  %s979_s22 = sphi %s1035_s22, %s1354_s22   ;;  %s975_s21 = sphi %s1033_s21, %s1353_s21  }
   0xc   : > { %p46_p0 = scmp.ne.s32.totalorder %s979_s22, %s975_s21  ;;  %p1327_p1 = scmp.eq.s32.totalorder %s1054_s25, 0 }
   0xd   : > { %p186_p3 = scmp.eq.s32.totalorder %s653_s26, 1  ;;  %p654_p5 = scmp.ge.s32.totalorder %s987_s24, 1 }
   0xe   : > { %p1063_p4 = por %p1327_p1, %p46_p0  ;;  %p193_p7 = scmp.lt.s32.totalorder %s987_s24, 3 }
   0xf   : > { %p1068_p6 = por %p186_p3, %p46_p0  ;;  %s989_s30 = smov [#allocation7]  }
  0x10   : > { %s1333_s27 = scalar_select %p1063_p4, 1, 0 }
  0x11   : > { %s1334_s28 = scalar_select %p1068_p6, 1, 0 }
  0x12   : > { %p1073_p8 = pnand %p654_p5, %p193_p7  ;;  %s205_s7 = sshll.u32 %s989_s30, 4  ;;  %s1077_s7 = int_to_ptr.vmem [resolvable:$true] %s205_s7 }
  0x13   : > { %s990_s9 = smov [#allocation8]   ;;  %s1337_s2 = sld [smem:[#allocation17_spill]] }
  0x14   : > { %s1335_s29 = scalar_select %p1073_p8, 1, 0 }
  0x15   : > { %p725_p9 = pneg %p1073_p8  ;;  %s221_s10 = sshll.u32 %s990_s9, 4  ;;  %s1088_s10 = int_to_ptr.vmem [resolvable:$true] %s221_s10 }
  0x17   : > { %p1084_p11 = pnand %p725_p9, %p1327_p1 }
  0x19   : > { %s793_s13 = scalar_lea.hbm %s1337_s2, 256  ;;  %p795_p13 = pneg %p1084_p11 }
  0x1a   : > { %p794_p12 = scmp.ne.s32.totalorder %s1337_s2, %s793_s13  ;;  %p800_p5 = scmp.lt.u32.totalorder %s793_s13, %s1337_s2 }
  0x1c   : > { %p796_p0 = pnand %p795_p13, %p794_p12 }
  0x1e   : > { %p797_p3 = pneg %p796_p0 }
  0x20   : > { %p802_p7 = pnand %p800_p5, %p797_p3 }
  0x22   : > { %805 = shalt.err (!%p802_p7)
}
  0x23   : > { %s806_s18 = scalar_lea.vmem %s1077_s7, 256  ;;  %p814_p2 = scmp.lt.s32.totalorder %s1077_s7, %s1077_s7 }
  0x24   : > { %p807_p9 = scmp.ne.s32.totalorder %s1077_s7, %s806_s18  ;;  %p815_p12 = scmp.lt.s32.totalorder %s806_s18, %s806_s18 }
  0x26   : > { %p809_p10 = pnand %p807_p9, %p795_p13  ;;  %p816_p0 = por %p815_p12, %p814_p2 }
  0x28   : > { %p810_p1 = pneg %p809_p10 }
  0x2a   : > { %p817_p6 = pnand %p816_p0, %p810_p1 }
  0x2c   : > { %820 = shalt.err (!%p817_p6)
}
  0x2d   : > { %s991_s19 = smov 64   ;;  %s992_s20 = smov 4  }
  0x2e   : > { %728 = dma.hbm_to_vmem [thread:$0]  (!%p1084_p11), %s1337_s2, 256, %s1077_s7, [#allocation6], %s991_s19, %s991_s19, %s992_s20  }
  0x2f   : > { %s1338_s4 = sld [smem:[#allocation18_spill]] }
  0x35   : > { %s821_s12 = scalar_lea.hbm %s1338_s4, 256 }
  0x36   : > { %p822_p2 = scmp.ne.s32.totalorder %s1338_s4, %s821_s12  ;;  %p828_p10 = scmp.lt.u32.totalorder %s821_s12, %s1338_s4 }
  0x38   : > { %p824_p1 = pnand %p822_p2, %p795_p13 }
  0x3a   : > { %p825_p6 = pneg %p824_p1 }
  0x3c   : > { %p830_p3 = pnand %p828_p10, %p825_p6 }
  0x3e   : > { %833 = shalt.err (!%p830_p3)
}
  0x3f   : > { %s834_s7 = scalar_lea.vmem %s1088_s10, 256  ;;  %p842_p12 = scmp.lt.s32.totalorder %s1088_s10, %s1088_s10 }
  0x40   : > { %p835_p5 = scmp.ne.s32.totalorder %s1088_s10, %s834_s7  ;;  %p843_p0 = scmp.lt.s32.totalorder %s834_s7, %s834_s7 }
  0x42   : > { %p837_p7 = pnand %p835_p5, %p795_p13  ;;  %p844_p2 = por %p843_p0, %p842_p12 }
  0x44   : > { %p838_p9 = pneg %p837_p7 }
  0x46   : > { %p845_p1 = pnand %p844_p2, %p838_p9 }
  0x48   : > { %848 = shalt.err (!%p845_p1)
}
  0x49   : > { %731 = dma.hbm_to_vmem [thread:$0]  (!%p1084_p11), %s1338_s4, 256, %s1088_s10, [#allocation9], %s991_s19, %s991_s19, %s992_s20  }
  0x4a   : > { %s1143_s26 = sadd.s32 1, %s987_s24   ;;  %s33_s8 = sadd.s32 1, %s983_s23 }
  0x4b   : > { %s30_s30 = ssub.s32 %s987_s24, %s1143_s26  ;;  %p40_p13 = scmp.ne.s32.totalorder %s983_s23, %s979_s22 }
  0x4c   : > { %p31_p6 = scmp.eq.s32.totalorder %s30_s30, 0  ;;  %p41_p10 = scmp.eq.s32.totalorder %s987_s24, 0 }
  0x4d   : > { %p1339_p3 = scmp.eq.s32.totalorder %s1054_s25, 1  ;;  %p745_p7 = scmp.lt.s32.totalorder %s987_s24, 2 }
  0x4e   : > { %s1159_s11 = scalar_select %p31_p6, %s983_s23, %s33_s8  }
  0x4f   : > { %p1153_p5 = por %p1339_p3, %p40_p13  ;;  %p42_p9 = por %p41_p10, %p40_p13 }
  0x50   : > { %1341 = sst [smem:[#allocation16_spill]] %s1159_s11  ;;  %s238_s12 = sand.u32 1, %s983_s23  }
  0x51   : > { %s1340_s9 = scalar_select %p1153_p5, 1, 0 }
  0x52   : > { %s1162_s10 = sshll.u32 %s238_s12, 2  ;;  %s659_s19 = sshll.u32 %s987_s24, 6 }
  0x53   : > { %s1168_s14 = scalar_lea.hbm %s1320_s0, %s659_s19  ;;  %s242_s15 = scalar_lea.vmem [#allocation2], %s1162_s10 }
  0x54   : > { %s249_s16 = sshll.u32 %s242_s15, 4  ;;  %p1173_p11 = pnand %p745_p7, %p42_p9  ;;  %s1171_s16 = int_to_ptr.vmem [resolvable:$true] %s249_s16 }
  0x55   : > { %s1180_s8 = scalar_lea.hbm %s1321_s1, %s659_s19  ;;  %s256_s30 = sand.u32 1, %s987_s24  }
  0x56   : > { %s239_s20 = scalar_lea.sflag [#allocation3], %s238_s12  ;;  %s849_s13 = scalar_lea.hbm %s1168_s14, 64 }
  0x57   : > { %p850_p12 = scmp.ne.s32.totalorder %s1168_s14, %s849_s13  ;;  %p851_p0 = pneg %p1173_p11 }
  0x58   : > { %s854_s4 = scalar_lea.hbm %s1320_s0, 128  ;;  %p855_p13 = scmp.lt.u32.totalorder %s1168_s14, %s1320_s0 }
  0x59   : > { %p852_p2 = pnand %p851_p0, %p850_p12  ;;  %p856_p6 = scmp.lt.u32.totalorder %s854_s4, %s849_s13 }
  0x5a   : > { %p858_p3 = scmp.lt.u32.totalorder %s849_s13, %s1168_s14 }
  0x5b   : > { %p853_p1 = pneg %p852_p2  ;;  %p857_p10 = por %p856_p6, %p855_p13 }
  0x5d   : > { %p859_p7 = por %p858_p3, %p857_p10 }
  0x5f   : > { %p860_p9 = pnand %p859_p7, %p853_p1 }
  0x61   : > { %863 = shalt.err (!%p860_p9)
}
  0x62   : > { %s864_s12 = scalar_lea.vmem %s1171_s16, 64  ;;  %s993_s2 = smov [#allocation2]  }
  0x63   : > { %p865_p12 = scmp.ne.s32.totalorder %s1171_s16, %s864_s12  ;;  %s869_s19 = sshll.u32 %s993_s2, 4  ;;  %s870_s19 = int_to_ptr.vmem [resolvable:$false] %s869_s19 }
  0x64   : > { %s871_s11 = scalar_lea.vmem %s870_s19, 128  ;;  %p872_p4 = scmp.lt.s32.totalorder %s1171_s16, %s870_s19 }
  0x65   : > { %p867_p2 = pnand %p865_p12, %p851_p0  ;;  %p873_p13 = scmp.lt.s32.totalorder %s871_s11, %s864_s12 }
  0x67   : > { %p868_p5 = pneg %p867_p2  ;;  %p874_p6 = por %p873_p13, %p872_p4 }
  0x69   : > { %p875_p10 = pnand %p874_p6, %p868_p5 }
  0x6b   : > { %878 = shalt.err (!%p875_p10)
}
  0x6c   : > { %735 = dma.hbm_to_vmem [thread:$0]  (!%p1173_p11), %s1168_s14, 64, %s1171_s16, %s239_s20  }
  0x6d   : > { %s260_s4 = scalar_lea.vmem [#allocation5], %s1162_s10  ;;  %s257_s13 = scalar_lea.sflag [#allocation6], %s256_s30 }
  0x6e   : > { %s267_s18 = sshll.u32 %s260_s4, 4  ;;  %s879_s15 = scalar_lea.hbm %s1180_s8, 64  ;;  %s268_s18 = int_to_ptr.vmem [resolvable:$true] %s267_s18 }
  0x6f   : > { %p880_p4 = scmp.ne.s32.totalorder %s1180_s8, %s879_s15  ;;  %s884_s2 = scalar_lea.hbm %s1321_s1, 128 }
  0x70   : > { %p885_p3 = scmp.lt.u32.totalorder %s1180_s8, %s1321_s1  ;;  %p886_p7 = scmp.lt.u32.totalorder %s884_s2, %s879_s15 }
  0x71   : > { %p882_p5 = pnand %p880_p4, %p851_p0  ;;  %p888_p12 = scmp.lt.u32.totalorder %s879_s15, %s1180_s8 }
  0x72   : > { %p887_p9 = por %p886_p7, %p885_p3 }
  0x73   : > { %p883_p1 = pneg %p882_p5 }
  0x74   : > { %p889_p2 = por %p888_p12, %p887_p9 }
  0x76   : > { %p890_p13 = pnand %p889_p2, %p883_p1 }
  0x78   : > { %893 = shalt.err (!%p890_p13)
}
  0x79   : > { %s894_s10 = scalar_lea.vmem %s268_s18, 64  ;;  %s994_s14 = smov [#allocation5]  }
  0x7a   : > { %p895_p6 = scmp.ne.s32.totalorder %s268_s18, %s894_s10  ;;  %s899_s16 = sshll.u32 %s994_s14, 4  ;;  %s900_s16 = int_to_ptr.vmem [resolvable:$false] %s899_s16 }
  0x7b   : > { %s901_s30 = scalar_lea.vmem %s900_s16, 128  ;;  %p902_p5 = scmp.lt.s32.totalorder %s268_s18, %s900_s16 }
  0x7c   : > { %p897_p10 = pnand %p895_p6, %p851_p0  ;;  %p903_p8 = scmp.lt.s32.totalorder %s901_s30, %s894_s10 }
  0x7e   : > { %p898_p4 = pneg %p897_p10  ;;  %p904_p3 = por %p903_p8, %p902_p5 }
  0x80   : > { %p905_p7 = pnand %p904_p3, %p898_p4 }
  0x82   : > { %908 = shalt.err (!%p905_p7)
}
  0x83   : > { %738 = dma.hbm_to_vmem [thread:$0]  (!%p1173_p11), %s1180_s8, 64, %s268_s18, %s257_s13  }
  0x84   : > { %p1343_p1 = scmp.ne.s32.totalorder %s1335_s29, 0 }
  0x85   : > { %s1233_s20 = sand.u32 (!%p1343_p1), 1, %s979_s22   ;;  %p1344_p8 = scmp.ne.s32.totalorder (!%p1343_p1), %s1333_s27, 0 }
  0x86   : > { %276 = sbr.rel (%p1343_p1) target bundleno = 837 (0x345), region = 44  ;;  %s1236_s4 = sshll.u32 (!%p1343_p1), %s1233_s20, 2 }
  0x87   : > { %s279_s15 = scalar_lea.sflag (!%p1343_p1), [#allocation3], %s1233_s20  ;;  %s282_s17 = scalar_lea.vmem (!%p1343_p1), [#allocation2], %s1236_s4 }
  0x8d   : > { %954 = dma.done.wait (%p1344_p8), %s279_s15, 64  }
  0x8e   : > { %956 = vsyncadd (%p1344_p8), %s279_s15, 4294967232  ;;  %s287_s29 = sand.u32 1, %s1054_s25   ;;  %s291_s8 = scalar_lea.vmem [#allocation5], %s1236_s4 }
  0x8f   : > { %s288_s7 = scalar_lea.sflag [#allocation6], %s287_s29 }
  0x90   : > { %958 = dma.done.wait (%p1344_p8), %s288_s7, 64  }
  0x91   : > { %960 = vsyncadd (%p1344_p8), %s288_s7, 4294967232  ;;  %p1345_p11 = scmp.eq.s32.totalorder %s1054_s25, 0 }
  0x93   : > { %962 = dma.done.wait (%p1345_p11), [#allocation6], 256   ;;  %p1346_p0 = pmov %p1345_p11 }
  0x95   : > { %964 = vsyncadd (%p1346_p0), [#allocation6], 4294967040  ;;  %p1347_p9 = pmov %p1346_p0 }
  0x96   : > { %p1348_p12 = pmov %p1346_p0 }
  0x97   : > { %966 = dma.done.wait (%p1347_p9), [#allocation9], 256  }
  0x98   : > { %968 = vsyncadd (%p1348_p12), [#allocation9], 4294967040  ;;  %v995_v0 = vmov 0.0   ;;  %vm996_vm0 = vmmov 0   ;;  %v787_v1 = vld [vmem:[#allocation7] sm:$0xff]   ;;  %v788_v2 = vld [vmem:[#allocation7 + $0x8] sm:$0xff]  }
  0x99   : > { %689 = vmatprep.subr.bf16.mxu0 %v995_v0  ;;  %693 = vmatprep.mubr.msk.bf16.mxu0 %vm996_vm0, %v995_v0  ;;  %v334_v3 = vld [vmem:[%s282_s17] sm:$0xf]  ;;  %vm358_vm1 = vcmask 261120   ;;  %vm409_vm2 = vcmask 1043456   ;;  %v404_v13 = vld [vmem:[%s291_s8] sm:$0xf] }
  0x9a   : > { %697 = vmatprep.subr.bf16.mxu1 %v995_v0  ;;  %699 = vmatprep.mubr.msk.bf16.mxu1 %vm996_vm0, %v995_v0  ;;  %v668_v4 = vld [vmem:[%s1323_s3] ss:$0 sm:$0xff]  ;;  %vm405_vm3 = vcmask 64512   ;;  %v790_v15 = vld [vmem:[#allocation8 + $0x8] sm:$0xff]   ;;  %v453_v16 = vunpack.c.l.bf16 %v404_v13  ;;  %s678_s2 = sshll.u32 %s1054_s25, 6  ;;  %s332_s19 = scalar_lea.vmem [#allocation10], %s1236_s4 }
  0x9b   : > { %690 = vmatpush3.bf16.msra.mxu0 %v787_v1  ;;  %v789_v14 = vld [vmem:[#allocation8] sm:$0xff]   ;;  %s541_s11 = sshll.u32 %s332_s19, 4  ;;  %s1276_s16 = scalar_lea.hbm %s1326_s6, %s678_s2  ;;  %s1278_s11 = int_to_ptr.vmem [resolvable:$true] %s541_s11 }
  0x9c   : > { %691 = vmatprep.subr.bf16.mxu0 %v995_v0  ;;  %v454_v17 = vsel %vm405_vm3, %v453_v16, 0.0  ;;  %v673_v24 = vld [vmem:[%s1325_s5] ss:$0 sm:$0xff]  ;;  %s528_s30 = scalar_lea.sflag [#allocation4], %s1233_s20  ;;  %s909_s25 = scalar_lea.vmem %s1278_s11, 64 }
  0x9d   : > { %455 = vadd.xlane.f32.xlu0 %v454_v17  ;;  %p910_p2 = scmp.ne.s32.totalorder %s1278_s11, %s909_s25  ;;  %p1349_p13 = scmp.ne.s32.totalorder %s1340_s9, 0 }
  0x9e   : > { %s997_s4 = smov [#allocation10]  }
  0x9f   : > { %692 = vmatpush3.bf16.msra.mxu0 %v788_v2  ;;  %p911_p6 = pnand %p910_p2, %p1349_p13  ;;  %s913_s15 = sshll.u32 %s997_s4, 4  ;;  %s914_s15 = int_to_ptr.vmem [resolvable:$false] %s913_s15 }
  0xa0   : > { %s915_s17 = scalar_lea.vmem %s914_s15, 128  ;;  %p916_p4 = scmp.lt.s32.totalorder %s1278_s11, %s914_s15 }
  0xa1   : > { %p912_p10 = pneg %p911_p6  ;;  %p917_p5 = scmp.lt.s32.totalorder %s915_s17, %s909_s25 }
  0xa2   : > { %694 = vmatmul.mubr.msk.bf16.vlgmr.msra.gmra.mrb[0].mxu0 %vm358_vm1, %v334_v3 }
  0xa3   : > { %p918_p3 = por %p917_p5, %p916_p4 }
  0xa5   : > { %p919_p7 = pnand %p918_p3, %p912_p10 }
 0x12a   : > { %v456_v23 = vpop.xlane.xlu0 %455 }
 0x12b   : > { %v469_v25 = vmul.f32 %v673_v24, %v456_v23 }
 0x175   : > { %v396_v5 = vpop.f32.mrb[0].mxu0 }
 0x176   : > { %v397_v6 = vadd.f32 %v668_v4, %v396_v5  ;;  %v695_v7 = vpop.f32.mrb[1].mxu0 }
 0x177   : > { %v399_v8 = vpop.f32.mrb[2].mxu0 }
 0x178   : > { %791 = vtanh.f32 %v397_v6  ;;  %v696_v9 = vpop.f32.mrb[3].mxu0 }
 0x182   : > { %v792_v10 = vpop.eup %791 }
 0x183   : > { %v403_v11 = vpack.c.bf16 %v792_v10, %v792_v10 }
 0x185   : > { %v411_v12 = vsel %vm409_vm2, %v403_v11, 0 }
 0x186   : > { %698 = vmatpush3.bf16.msra.mxu1 %v411_v12 }
 0x187   : > { %703 = vmatprep.subr.bf16.mxu1 %v995_v0 }
 0x189   : > { %700 = vmatmul.mubr.msk.bf16.vlgmr.msra.gmra.mrb[0].mxu1 %vm405_vm3, %v404_v13 }
 0x18a   : > { %704 = vmatpush3.bf16.msra.mxu1 %v789_v14  ;;  %707 = vmatprep.mubr.msk.bf16.mxu1 %vm996_vm0, %v995_v0 }
 0x18b   : > { %705 = vmatprep.subr.bf16.mxu1 %v995_v0 }
 0x18e   : > { %706 = vmatpush3.bf16.msra.mxu1 %v790_v15 }
 0x25c   : > { %v447_v18 = vpop.f32.mrb[0].mxu1 }
 0x25d   : > { %v457_v19 = vpack.c.bf16 %v447_v18, %v447_v18  ;;  %v701_v20 = vpop.f32.mrb[1].mxu1 }
 0x25e   : > { %v450_v21 = vpop.f32.mrb[2].mxu1 }
 0x25f   : > { %v702_v22 = vpop.f32.mrb[3].mxu1  ;;  %708 = vmatmul.mubr.msk.bf16.vlgmr.msra.gmra.mrb[4].mxu1 %vm358_vm1, %v457_v19 }
 0x332   : > { %v519_v26 = vpop.f32.mrb[4].mxu1 }
 0x333   : > { %v520_v27 = vadd.f32 %v519_v26, %v469_v25  ;;  %v709_v28 = vpop.f32.mrb[5].mxu1 }
 0x334   : > { %v522_v29 = vpop.f32.mrb[6].mxu1 }
 0x335   : > { %v525_v30 = vpack.c.bf16 %v520_v27, %v520_v27  ;;  %v710_v31 = vpop.f32.mrb[7].mxu1 }
 0x337   : > { %526 = vst [vmem:[%s332_s19] sm:$0xf] %v525_v30 }
 0x338   : > { %922 = shalt.err (!%p919_p7)
}
 0x339   : > { %s923_s20 = scalar_lea.hbm %s1276_s16, 64  ;;  %s927_s8 = scalar_lea.hbm %s1326_s6, 128 }
 0x33a   : > { %p924_p1 = scmp.ne.s32.totalorder %s1276_s16, %s923_s20  ;;  %p928_p0 = scmp.lt.u32.totalorder %s1276_s16, %s1326_s6 }
 0x33b   : > { %p929_p9 = scmp.lt.u32.totalorder %s927_s8, %s923_s20  ;;  %p931_p2 = scmp.lt.u32.totalorder %s923_s20, %s1276_s16 }
 0x33c   : > { %p925_p8 = pnand %p924_p1, %p1349_p13 }
 0x33d   : > { %p930_p12 = por %p929_p9, %p928_p0 }
 0x33e   : > { %p926_p11 = pneg %p925_p8 }
 0x33f   : > { %p932_p6 = por %p931_p2, %p930_p12 }
 0x341   : > { %p933_p10 = pnand %p932_p6, %p926_p11 }
 0x343   : > { %936 = shalt.err (!%p933_p10)
}
 0x344   : > { %723 = dma.vmem_to_hbm [thread:$0]  (%p1349_p13), %s1278_s11, 64, %s1276_s16, %s528_s30  }
 0x345 PF: > { %s553_s13 = sand.u32 1, %s975_s21   ;;  %p1350_p4 = scmp.ne.s32.totalorder %s1334_s28, 0 }
 0x346   : > { %p1351_p5 = scmp.ge.s32.totalorder %s987_s24, 2  ;;  %s554_s12 = scalar_lea.sflag [#allocation4], %s553_s13 }
 0x348   : > { %p740_p3 = pnand %p1351_p5, %p1350_p4 }
 0x34a   : > { %970 = dma.done.wait (!%p740_p3), %s554_s12, 64  }
 0x34b   : > { %972 = vsyncadd (!%p740_p3), %s554_s12, 4294967232  ;;  %s1352_s2 = sld [smem:[#allocation16_spill]]  ;;  %p23_p7 = scmp.ge.s32.totalorder %s1143_s26, 4  }
 0x34c   : > { %s1353_s21 = smov %s979_s22  ;;  %s1354_s22 = smov %s983_s23 }
 0x34d   : > { %s1356_s24 = smov %s1143_s26  ;;  %25 = sbr.rel (!%p23_p7) target bundleno = 11 (0xb), region = 110 }
 0x351   : > { %s1355_s23 = smov %s1352_s2 }
 0x354   :  { %559 = vsyncpa [#allocation3], 1 }
 0x355   :  { %561 = vsyncpa [#allocation3 + $0x1], 1 }
 0x356   :  { %562 = vsyncpa [#allocation6], 1 }
 0x357   :  { %564 = vsyncpa [#allocation6 + $0x1], 1 }
 0x358   :  { %565 = vsyncpa [#allocation9], 1 }
 0x359   :  { %566 = vsyncpa [#allocation4], 1 }
 0x35a   :  { %568 = vsyncpa [#allocation4 + $0x1], 1 }

</bundles_post_ra>
